<compile_context>
chip_gen: v7x
topology: tpu7x:2x2x1
jax: 0.10.0
libtpu: 0.0.40
codegen_flags: <defaults>
</compile_context>

<pallas_src>
import jax
import jax.numpy as jnp
from jax.experimental import pallas as pl
from jax.experimental.pallas import tpu as pltpu

TM_MAX = 4096   # max batch-tile rows; (4096 x 32) f32 double-buffered is well under
                # the default scoped-VMEM limit on v5e/v6e/v7x.


def mlp_kernel(x_ref, w1_ref, b1_ref, w2_ref, b2_ref, w3_ref, b3_ref, o_ref):
    # x_ref: (tm, IN) f32     w{1,2,3}_ref: bf16 weights     b{1,2,3}_ref: f32 biases
    # o_ref: (tm, OUT) f32
    x = x_ref[...].astype(jnp.bfloat16)

    h = jnp.dot(x, w1_ref[...], preferred_element_type=jnp.float32) + b1_ref[...]
    h = jnp.maximum(h, 0.0).astype(jnp.bfloat16)

    h = jnp.dot(h, w2_ref[...], preferred_element_type=jnp.float32) + b2_ref[...]
    h = jnp.maximum(h, 0.0).astype(jnp.bfloat16)

    out = jnp.dot(h, w3_ref[...], preferred_element_type=jnp.float32) + b3_ref[...]
    o_ref[...] = out.astype(o_ref.dtype)


def _round_up(n, m):
    return ((n + m - 1) // m) * m


def _choose_tm(batch):
    # Tiles are multiples of 16 rows (friendly to bf16 sublane packing).
    if batch <= 16:
        return 16                                    # one tiny tile
    # Aim for >= 2 grid steps so v7x's two TensorCores both get work.
    half = _round_up(pl.cdiv(batch, 2), 16)
    return min(TM_MAX, half)


def simple_model_forward(x, params):
    """Pallas forward pass.  x: (B, input_size) f32, params: f32 (W, b) tuples."""
    w1, b1, w2, b2, w3, b3 = params
    B, input_size = x.shape
    h1, h2 = w1.shape[1], w2.shape[1]
    output_size = w3.shape[1]

    tm = _choose_tm(B)
    pad_b = _round_up(B, tm)
    if pad_b != B:
        x = jnp.pad(x, ((0, pad_b - B), (0, 0)))     # batch rows only; no lane padding

    # bf16 weights for the MXU; biases stay f32 (added after the f32-accumulated dot).
    w1b = w1.astype(jnp.bfloat16)
    w2b = w2.astype(jnp.bfloat16)
    w3b = w3.astype(jnp.bfloat16)

    out = pl.pallas_call(
        mlp_kernel,
        out_shape=jax.ShapeDtypeStruct((pad_b, output_size), jnp.float32),
        grid_spec=pltpu.PrefetchScalarGridSpec(
            num_scalar_prefetch=0,
            grid=(pad_b // tm,),
            in_specs=[
                # x tile: pipelined over the batch; last dim == full array dim (legal).
                pl.BlockSpec((tm, input_size), lambda i: (i, 0)),
                # Weights / biases: constant index_map -> fetched once, VMEM-resident.
                pl.BlockSpec((input_size, h1), lambda i: (0, 0)),
                pl.BlockSpec((1, h1), lambda i: (0, 0)),
                pl.BlockSpec((h1, h2), lambda i: (0, 0)),
                pl.BlockSpec((1, h2), lambda i: (0, 0)),
                pl.BlockSpec((h2, output_size), lambda i: (0, 0)),
                pl.BlockSpec((1, output_size), lambda i: (0, 0)),
            ],
            # Direct (pad_b, output_size) writeback: no padded slab, no extra slice pass.
            out_specs=pl.BlockSpec((tm, output_size), lambda i: (i, 0)),
        ),
        compiler_params=pltpu.CompilerParams(
            dimension_semantics=("parallel",),   # megacore / v7x dual-TC batch sharding
        ),
    )(x, w1b, b1, w2b, b2, w3b, b3)

    return out[:B] if pad_b != B else out


def init_params(key, input_size, output_size):
    # Deterministic init mimicking nn.Linear's U(-1/sqrt(fan_in), 1/sqrt(fan_in)).
    # Weights stored as (in_features, out_features) so forward is x @ W + b.
    dims = [(input_size, 64), (64, 32), (32, output_size)]
    params = []
    for fan_in, fan_out in dims:
        kw, kb, key = jax.random.split(key, 3)
        bound = 1.0 / jnp.sqrt(float(fan_in))
        w = jax.random.uniform(kw, (fan_in, fan_out), jnp.float32, -bound, bound)
        b = jax.random.uniform(kb, (1, fan_out), jnp.float32, -bound, bound)
        params.extend([w, b])
    return tuple(params)


def reference_forward(x, params):
    w1, b1, w2, b2, w3, b3 = params
    h1 = jnp.maximum(x @ w1 + b1, 0.0)
    h2 = jnp.maximum(h1 @ w2 + b2, 0.0)
    return h2 @ w3 + b3


if __name__ == "__main__":
    input_size = 32
    output_size = 16
    batch = 8

    key = jax.random.PRNGKey(0)
    kx, kp = jax.random.split(key)
    x = jax.random.normal(kx, (batch, input_size), jnp.float32)
    params = init_params(kp, input_size, output_size)

    out = simple_model_forward(x, params)
    out = jax.block_until_ready(out)

    ref = reference_forward(x, params)
    assert out.shape == (batch, output_size)
    # bf16 MXU operands vs. f32 reference -> loosened tolerance (review caveat).
    assert jnp.allclose(out, ref, atol=5e-2, rtol=5e-2), float(jnp.max(jnp.abs(out - ref)))

    print("KERNEL_OK")
</pallas_src>

<mosaic_0001>
module attributes {stable_mosaic.version = 11 : i64} {
  func.func @mlp_kernel(%arg0: i32, %arg1: memref<16x32xf32, #tpu.memory_space<vmem>>, %arg2: memref<32x64xbf16, #tpu.memory_space<vmem>>, %arg3: memref<1x64xf32, #tpu.memory_space<vmem>>, %arg4: memref<64x32xbf16, #tpu.memory_space<vmem>>, %arg5: memref<1x32xf32, #tpu.memory_space<vmem>>, %arg6: memref<32x16xbf16, #tpu.memory_space<vmem>>, %arg7: memref<1x16xf32, #tpu.memory_space<vmem>>, %arg8: memref<16x16xf32, #tpu.memory_space<vmem>>) attributes {dimension_semantics = [#tpu.dimension_semantics<parallel>], iteration_bounds = array<i64: 1>, scalar_prefetch = 0 : i64, scratch_operands = 0 : i64, tpu.core_type = #tpu.core_type<tc>, window_params = [{transform_indices = @transform_0, window_bounds = array<i64: 16, 32>}, {pipeline_mode = #tpu.pipeline_mode<synchronous>, transform_indices = @transform_1, window_bounds = array<i64: 32, 64>}, {pipeline_mode = #tpu.pipeline_mode<synchronous>, transform_indices = @transform_2, window_bounds = array<i64: 1, 64>}, {pipeline_mode = #tpu.pipeline_mode<synchronous>, transform_indices = @transform_3, window_bounds = array<i64: 64, 32>}, {pipeline_mode = #tpu.pipeline_mode<synchronous>, transform_indices = @transform_4, window_bounds = array<i64: 1, 32>}, {pipeline_mode = #tpu.pipeline_mode<synchronous>, transform_indices = @transform_5, window_bounds = array<i64: 32, 16>}, {pipeline_mode = #tpu.pipeline_mode<synchronous>, transform_indices = @transform_6, window_bounds = array<i64: 1, 16>}, {transform_indices = @transform_7, window_bounds = array<i64: 16, 16>}]} {
    %c0 = arith.constant 0 : index
    %c0_0 = arith.constant 0 : index
    %0 = vector.load %arg1[%c0, %c0_0] : memref<16x32xf32, #tpu.memory_space<vmem>>, vector<16x32xf32>
    %1 = arith.truncf %0 : vector<16x32xf32> to vector<16x32xbf16>
    %c0_1 = arith.constant 0 : index
    %c0_2 = arith.constant 0 : index
    %2 = vector.load %arg2[%c0_1, %c0_2] : memref<32x64xbf16, #tpu.memory_space<vmem>>, vector<32x64xbf16>
    %cst = arith.constant dense<0.000000e+00> : vector<16x64xf32>
    %3 = tpu.matmul %1, %2, %cst {dimension_numbers = #tpu.dot_dimension_numbers<[1], [0], [0], [1], [0, 0, 1, 1], [], []>} : vector<16x32xbf16>, vector<32x64xbf16>, vector<16x64xf32> -> vector<16x64xf32>
    %c0_3 = arith.constant 0 : index
    %c0_4 = arith.constant 0 : index
    %4 = vector.load %arg3[%c0_3, %c0_4] : memref<1x64xf32, #tpu.memory_space<vmem>>, vector<1x64xf32>
    %5 = vector.broadcast %4 : vector<1x64xf32> to vector<16x64xf32>
    %6 = arith.addf %3, %5 : vector<16x64xf32>
    %cst_5 = arith.constant 0.000000e+00 : f32
    %7 = vector.broadcast %cst_5 : f32 to vector<16x64xf32>
    %8 = arith.maximumf %6, %7 : vector<16x64xf32>
    %9 = arith.truncf %8 : vector<16x64xf32> to vector<16x64xbf16>
    %c0_6 = arith.constant 0 : index
    %c0_7 = arith.constant 0 : index
    %10 = vector.load %arg4[%c0_6, %c0_7] : memref<64x32xbf16, #tpu.memory_space<vmem>>, vector<64x32xbf16>
    %cst_8 = arith.constant dense<0.000000e+00> : vector<16x32xf32>
    %11 = tpu.matmul %9, %10, %cst_8 {dimension_numbers = #tpu.dot_dimension_numbers<[1], [0], [0], [1], [0, 0, 1, 1], [], []>} : vector<16x64xbf16>, vector<64x32xbf16>, vector<16x32xf32> -> vector<16x32xf32>
    %c0_9 = arith.constant 0 : index
    %c0_10 = arith.constant 0 : index
    %12 = vector.load %arg5[%c0_9, %c0_10] : memref<1x32xf32, #tpu.memory_space<vmem>>, vector<1x32xf32>
    %13 = vector.broadcast %12 : vector<1x32xf32> to vector<16x32xf32>
    %14 = arith.addf %11, %13 : vector<16x32xf32>
    %cst_11 = arith.constant 0.000000e+00 : f32
    %15 = vector.broadcast %cst_11 : f32 to vector<16x32xf32>
    %16 = arith.maximumf %14, %15 : vector<16x32xf32>
    %17 = arith.truncf %16 : vector<16x32xf32> to vector<16x32xbf16>
    %c0_12 = arith.constant 0 : index
    %c0_13 = arith.constant 0 : index
    %18 = vector.load %arg6[%c0_12, %c0_13] : memref<32x16xbf16, #tpu.memory_space<vmem>>, vector<32x16xbf16>
    %cst_14 = arith.constant dense<0.000000e+00> : vector<16x16xf32>
    %19 = tpu.matmul %17, %18, %cst_14 {dimension_numbers = #tpu.dot_dimension_numbers<[1], [0], [0], [1], [0, 0, 1, 1], [], []>} : vector<16x32xbf16>, vector<32x16xbf16>, vector<16x16xf32> -> vector<16x16xf32>
    %c0_15 = arith.constant 0 : index
    %c0_16 = arith.constant 0 : index
    %20 = vector.load %arg7[%c0_15, %c0_16] : memref<1x16xf32, #tpu.memory_space<vmem>>, vector<1x16xf32>
    %21 = vector.broadcast %20 : vector<1x16xf32> to vector<16x16xf32>
    %22 = arith.addf %19, %21 : vector<16x16xf32>
    %c0_17 = arith.constant 0 : index
    %c0_18 = arith.constant 0 : index
    %23 = vector.load %arg8[%c0_17, %c0_18] : memref<16x16xf32, #tpu.memory_space<vmem>>, vector<16x16xf32>
    tpu.vector_store %arg8[%c0_17, %c0_18], %22 {strides = array<i32>} : memref<16x16xf32, #tpu.memory_space<vmem>>, vector<16x16xf32>,
    return
  }
  func.func @transform_0(%arg0: i32) -> (i32, i32) {
    %c0_i32 = arith.constant 0 : i32
    %c0_i32_0 = arith.constant 0 : i32
    return %arg0, %c0_i32 : i32, i32
  }
  func.func @transform_1(%arg0: i32) -> (i32, i32) {
    %c0_i32 = arith.constant 0 : i32
    %c0_i32_0 = arith.constant 0 : i32
    %c0_i32_1 = arith.constant 0 : i32
    return %c0_i32, %c0_i32_0 : i32, i32
  }
  func.func @transform_2(%arg0: i32) -> (i32, i32) {
    %c0_i32 = arith.constant 0 : i32
    %c0_i32_0 = arith.constant 0 : i32
    %c0_i32_1 = arith.constant 0 : i32
    return %c0_i32, %c0_i32_0 : i32, i32
  }
  func.func @transform_3(%arg0: i32) -> (i32, i32) {
    %c0_i32 = arith.constant 0 : i32
    %c0_i32_0 = arith.constant 0 : i32
    %c0_i32_1 = arith.constant 0 : i32
    return %c0_i32, %c0_i32_0 : i32, i32
  }
  func.func @transform_4(%arg0: i32) -> (i32, i32) {
    %c0_i32 = arith.constant 0 : i32
    %c0_i32_0 = arith.constant 0 : i32
    %c0_i32_1 = arith.constant 0 : i32
    return %c0_i32, %c0_i32_0 : i32, i32
  }
  func.func @transform_5(%arg0: i32) -> (i32, i32) {
    %c0_i32 = arith.constant 0 : i32
    %c0_i32_0 = arith.constant 0 : i32
    %c0_i32_1 = arith.constant 0 : i32
    return %c0_i32, %c0_i32_0 : i32, i32
  }
  func.func @transform_6(%arg0: i32) -> (i32, i32) {
    %c0_i32 = arith.constant 0 : i32
    %c0_i32_0 = arith.constant 0 : i32
    %c0_i32_1 = arith.constant 0 : i32
    return %c0_i32, %c0_i32_0 : i32, i32
  }
  func.func @transform_7(%arg0: i32) -> (i32, i32) {
    %c0_i32 = arith.constant 0 : i32
    %c0_i32_0 = arith.constant 0 : i32
    return %arg0, %c0_i32 : i32, i32
  }
}

</mosaic_0001>

<bundles_post_ra>
// kernel: tpu_custom_call.1
= control target key start
LH: loop header
LB: loop body
LE: loop exit
PB: predicated region body
PF: predicated region fallthrough
CT: control target
= control target key end

     0   :  { %v365_v1 = vmov 0.0   ;;  %vm366_vm0 = vmmov 0   ;;  %vm54_vm1 = vcmask 261120   ;;  %s466_s0 = inlined_call_operand.vmem [shape: f32[16,32], index: 0, kind: input, shape index: {}]   ;;  %s467_s1 = inlined_call_operand.vmem [shape: bf16[32,64], index: 1, kind: input, shape index: {}]   ;;  %s468_s2 = inlined_call_operand.vmem [shape: f32[1,64], index: 2, kind: input, shape index: {}]   ;;  %s469_s3 = inlined_call_operand.vmem [shape: bf16[64,32], index: 3, kind: input, shape index: {}]   ;;  %s470_s4 = inlined_call_operand.vmem [shape: f32[1,32], index: 4, kind: input, shape index: {}]   ;;  %s471_s5 = inlined_call_operand.vmem [shape: bf16[32,16], index: 5, kind: input, shape index: {}]   ;;  %s472_s6 = inlined_call_operand.vmem [shape: f32[1,16], index: 6, kind: input, shape index: {}]   ;;  %s473_s7 = inlined_call_operand.hbm [shape: f32[16,16], index: 7, kind: output, shape index: {}]  }
   0x1   :  { %v333_v0 = vld [vmem:[%s467_s1] sm:$0xff]   ;;  %300 = vmatprep.subr.bf16.mxu0 %v365_v1  ;;  %v334_v2 = vld [vmem:[%s467_s1 + $0x8] sm:$0xff]   ;;  %308 = vmatprep.subr.bf16.mxu1 %v365_v1 }
   0x2   :  { %301 = vmatpush3.bf16.msra.mxu0 %v333_v0  ;;  %304 = vmatprep.mubr.msk.bf16.mxu0 %vm366_vm0, %v365_v1  ;;  %v28_v3 = vld [vmem:[%s466_s0] sm:$0xff]  ;;  %v29_v4 = vld [vmem:[%s466_s0 + $0x8] sm:$0xff] }
   0x3   :  { %302 = vmatprep.subr.bf16.mxu0 %v365_v1  ;;  %v335_v5 = vld [vmem:[%s469_s3] sm:$0xff]   ;;  %316 = vmatprep.mubr.msk.bf16.mxu1 %vm366_vm0, %v365_v1  ;;  %v336_v6 = vld [vmem:[%s469_s3 + $0x8] sm:$0xff]   ;;  %v30_v7 = vpack.c.bf16 %v29_v4, %v28_v3 }
   0x4   :  { %309 = vmatpush3.bf16.msra.mxu1 %v335_v5 }
   0x5   :  { %310 = vmatprep.subr.bf16.mxu1 %v365_v1 }
   0x6   :  { %303 = vmatpush3.bf16.msra.mxu0 %v334_v2 }
   0x7   :  { %320 = vmatprep.subr.bf16.mxu0 %v365_v1 }
   0x8   :  { %12 = vsyncpa [#allocation3], 0  ;;  %311 = vmatpush3.bf16.msra.mxu1 %v336_v6  ;;  %v337_v8 = vld [vmem:[%s469_s3 + $0x10] sm:$0xff]   ;;  %v338_v9 = vld [vmem:[%s469_s3 + $0x18] sm:$0xff]   ;;  %vm141_vm2 = vcmask 523264   ;;  %vm256_vm3 = vcmask 130048  }
   0x9   :  { %305 = vmatmul.mubr.msk.bf16.vlgmr.msra.gmra.mrb[0].mxu0 %vm54_vm1, %v30_v7  ;;  %312 = vmatprep.subr.bf16.mxu1 %v365_v1  ;;  %v275_v10 = vld [vmem:[%s468_s2] ss:$0 sm:$0xff]  ;;  %v340_v21 = vld [vmem:[%s471_s5 + $0x8] sm:$0xff]  }
   0xa   :  { %324 = vmatprep.mubr.msk.bf16.mxu0 %vm366_vm0, %v365_v1  ;;  %v339_v20 = vld [vmem:[%s471_s5] sm:$0xff]   ;;  %s367_s5 = smov [#allocation2]  }
   0xb   :  { %321 = vmatpush3.bf16.msra.mxu0 %v339_v20  ;;  %v279_v22 = vld [vmem:[%s470_s4] ss:$0 sm:$0xff]  ;;  %s264_s23 = sshll.u32 %s367_s5, 4  ;;  %s265_s23 = int_to_ptr.vmem [resolvable:$true] %s264_s23 }
   0xc   :  { %313 = vmatpush3.bf16.msra.mxu1 %v337_v8  ;;  %322 = vmatprep.subr.bf16.mxu0 %v365_v1  ;;  %v285_v32 = vld [vmem:[%s472_s6] ss:$0 sm:$0xff]  ;;  %s341_s4 = scalar_lea.vmem %s265_s23, 256  ;;  %p346_p1 = scmp.lt.s32.totalorder %s265_s23, %s265_s23 }
   0xd   :  { %314 = vmatprep.subr.bf16.mxu1 %v365_v1  ;;  %p342_p0 = scmp.ne.s32.totalorder %s265_s23, %s341_s4  ;;  %p347_p2 = scmp.lt.s32.totalorder %s341_s4, %s341_s4 }
   0xf   :  { %323 = vmatpush3.bf16.msra.mxu0 %v340_v21  ;;  %p348_p3 = por %p347_p2, %p346_p1 }
  0x10   :  { %315 = vmatpush3.bf16.msra.mxu1 %v338_v9 }
  0x11   :  { %p349_p4 = pnand %p348_p3, %p342_p0 }
  0xdc   :  { %v92_v11 = vpop.f32.mrb[0].mxu0 }
  0xdd   :  { %v93_v12 = vadd.f32 %v275_v10, %v92_v11  ;;  %v306_v13 = vpop.f32.mrb[1].mxu0 }
  0xde   :  { %v95_v14 = vpop.f32.mrb[2].mxu0 }
  0xdf   :  { %v96_v15 = vadd.f32 %v275_v10, %v95_v14  ;;  %v307_v16 = vpop.f32.mrb[3].mxu0  ;;  %v99_v17 = vmax.f32 %v93_v12, 0.0 }
  0xe1   :  { %v100_v18 = vmax.f32 %v96_v15, 0.0 }
  0xe3   :  { %v101_v19 = vpack.c.bf16 %v100_v18, %v99_v17 }
  0xe5   :  { %317 = vmatmul.mubr.msk.bf16.vlgmr.msra.gmra.mrb[0].mxu1 %vm141_vm2, %v101_v19 }
 0x1b8   :  { %v179_v23 = vpop.f32.mrb[0].mxu1 }
 0x1b9   :  { %v180_v24 = vadd.f32 %v279_v22, %v179_v23  ;;  %v318_v25 = vpop.f32.mrb[1].mxu1 }
 0x1ba   :  { %v182_v26 = vpop.f32.mrb[2].mxu1 }
 0x1bb   :  { %v183_v27 = vadd.f32 %v279_v22, %v182_v26  ;;  %v319_v28 = vpop.f32.mrb[3].mxu1  ;;  %v186_v29 = vmax.f32 %v180_v24, 0.0 }
 0x1bd   :  { %v187_v30 = vmax.f32 %v183_v27, 0.0 }
 0x1bf   :  { %v188_v31 = vpack.c.bf16 %v187_v30, %v186_v29 }
 0x1c1   :  { %325 = vmatmul.mubr.msk.bf16.vlgmr.msra.gmra.mrb[4].mxu0 %vm54_vm1, %v188_v31 }
 0x294   :  { %v249_v33 = vpop.f32.mrb[4].mxu0 }
 0x295   :  { %v250_v34 = vadd.f32 %v285_v32, %v249_v33  ;;  %v326_v35 = vpop.f32.mrb[5].mxu0 }
 0x296   :  { %v252_v36 = vpop.f32.mrb[6].mxu0 }
 0x297   :  { %257 = vst.msk [vmem:[#allocation2] sm:$0xff] %vm256_vm3, %v250_v34  ;;  %v253_v37 = vadd.f32 %v285_v32, %v252_v36  ;;  %v327_v38 = vpop.f32.mrb[7].mxu0 }
 0x299   :  { %258 = vst.msk [vmem:[#allocation2 + $0x8] sm:$0xff] %vm256_vm3, %v253_v37 }
 0x29a   :  { %352 = shalt.err (!%p349_p4)
}
 0x29b   :  { %s353_s25 = scalar_lea.hbm %s473_s7, 256 }
 0x29c   :  { %p354_p5 = scmp.ne.s32.totalorder %s473_s7, %s353_s25  ;;  %p357_p6 = scmp.lt.u32.totalorder %s353_s25, %s473_s7 }
 0x29e   :  { %p359_p7 = pnand %p357_p6, %p354_p5 }
 0x2a0   :  { %362 = shalt.err (!%p359_p7)
}
 0x2a1   :  { %s368_s30 = smov 128   ;;  %s369_s8 = smov 8  }
 0x2a2   :  { %270 = dma.vmem_to_hbm [thread:$0]  %s265_s23, 256, %s473_s7, [#allocation3], %s368_s30, %s368_s30, %s369_s8  }
 0x2a3   :  { %363 = dma.done.wait [#allocation3], 256  }
 0x2a4   :  { %364 = vsyncadd [#allocation3], 4294967040 }
 0x2a5   :  { %274 = vsyncpa [#allocation3], 1 }

</bundles_post_ra>
